<compile_context>
chip_gen: v7x
topology: tpu7x:2x2x1
jax: 0.10.0
libtpu: 0.0.40
codegen_flags: <defaults>
</compile_context>

<pallas_src>
import functools

import jax
import jax.numpy as jnp
from jax.experimental import pallas as pl
from jax.experimental.pallas import tpu as pltpu

HIDDEN = 256


def _actor_kernel(x_ref, w1_ref, b1_ref, w2_ref, b2_ref, w3_ref, b3_ref,
                  *rest, add_noise):
    if add_noise:
        noise_ref, std_ref, o_ref = rest
    else:
        (o_ref,) = rest

    # Layer 1: Linear(state_dim -> 256) + ReLU   (bf16 in, f32 accumulate)
    h1 = jnp.dot(x_ref[...], w1_ref[...], preferred_element_type=jnp.float32)
    h1 = jnp.maximum(h1 + b1_ref[...], 0.0).astype(jnp.bfloat16)

    # Layer 2: Linear(256 -> 256) + ReLU
    h2 = jnp.dot(h1, w2_ref[...], preferred_element_type=jnp.float32)
    h2 = jnp.maximum(h2 + b2_ref[...], 0.0).astype(jnp.bfloat16)

    # Layer 3: mean head only (w3/b3 pre-sliced to action_dim in the wrapper)
    y = jnp.dot(h2, w3_ref[...], preferred_element_type=jnp.float32) + b3_ref[...]

    a = jnp.tanh(y)
    if add_noise:
        # actions.add_(randn_like(actions) * std)
        a = a + noise_ref[...] * std_ref[0]
    o_ref[...] = jnp.clip(a, -1.0, 1.0)


def _round_up(x, m):
    return (x + m - 1) // m * m


def init_params(key, state_dim, action_dim):
    """PyTorch-Linear-style init (uniform +-1/sqrt(fan_in)); W stored [in, out]."""
    dims = [(state_dim, HIDDEN), (HIDDEN, HIDDEN), (HIDDEN, 2 * action_dim)]
    params = []
    for i, (fan_in, fan_out) in enumerate(dims):
        kw, kb = jax.random.split(jax.random.fold_in(key, i))
        bound = 1.0 / jnp.sqrt(jnp.float32(fan_in))
        w = jax.random.uniform(kw, (fan_in, fan_out), jnp.float32, -bound, bound)
        b = jax.random.uniform(kb, (1, fan_out), jnp.float32, -bound, bound)
        params.extend([w, b])
    return tuple(params)


def prepare_params(params, action_dim):
    """One-time wrapper-side prep: slice the mean head and cast weights to bf16."""
    w1, b1, w2, b2, w3, b3 = params
    w3 = w3[:, :action_dim]          # chunk(2, dim=1)[0] done once, host-side
    b3 = b3[:, :action_dim]
    return (w1.astype(jnp.bfloat16), b1,
            w2.astype(jnp.bfloat16), b2,
            w3.astype(jnp.bfloat16), b3)


def sac_actor_forward(states, prepared_params, *, action_dim, std=0.0,
                      noise=None, tile_b=256):
    B, S = states.shape
    w1, b1, w2, b2, w3, b3 = prepared_params
    add_noise = float(std) != 0.0
    if add_noise and noise is None:
        raise ValueError("noise array is required when std != 0")

    xs = states.astype(jnp.bfloat16)

    # Batch tile: 256 fills the v6e/v7x 256x256 MXU (and is a multiple of 128
    # for v5e); tiny batches collapse to a single 8-row-aligned padded tile.
    tile_b = max(8, min(tile_b, _round_up(B, 8)))
    b_pad = _round_up(B, tile_b)
    if b_pad != B:
        xs = jnp.pad(xs, ((0, b_pad - B), (0, 0)))
        if add_noise:
            noise = jnp.pad(noise, ((0, b_pad - B), (0, 0)))
    grid = (b_pad // tile_b,)

    resident = lambda i: (0, 0)   # same block every step -> stays VMEM-resident
    batched = lambda i: (i, 0)    # batch-tiled, auto double-buffered

    in_specs = [
        pl.BlockSpec((tile_b, S), batched),            # states
        pl.BlockSpec((S, HIDDEN), resident),           # w1
        pl.BlockSpec((1, HIDDEN), resident),           # b1
        pl.BlockSpec((HIDDEN, HIDDEN), resident),      # w2
        pl.BlockSpec((1, HIDDEN), resident),           # b2
        pl.BlockSpec((HIDDEN, action_dim), resident),  # w3 (mean head only)
        pl.BlockSpec((1, action_dim), resident),       # b3 (mean head only)
    ]
    args = [xs, w1, b1, w2, b2, w3, b3]
    if add_noise:
        in_specs.append(pl.BlockSpec((tile_b, action_dim), batched))        # noise
        in_specs.append(pl.BlockSpec(memory_space=pltpu.MemorySpace.SMEM))  # std
        args.append(noise.astype(jnp.float32))
        args.append(jnp.asarray([std], jnp.float32))

    kernel = functools.partial(_actor_kernel, add_noise=add_noise)
    out = pl.pallas_call(
        kernel,
        out_shape=jax.ShapeDtypeStruct((b_pad, action_dim), jnp.float32),
        grid=grid,
        in_specs=in_specs,
        out_specs=pl.BlockSpec((tile_b, action_dim), batched),
        compiler_params=pltpu.CompilerParams(
            dimension_semantics=("parallel",)),   # 2-TC sharding on v7x
    )(*args)
    # TODO(synk): if the actor output feeds further TPU work at large B, emit a
    # lane-padded (tile_b, 128) slab instead of the action_dim-wide masked store.
    return out[:B]


if __name__ == "__main__":
    # Small synthetic shapes consistent with the module:
    #   state_shape = (32,), action_shape = (4,), batch = 8
    B, STATE_DIM, ACTION_DIM = 8, 32, 4

    key = jax.random.PRNGKey(0)
    k_x, k_p, k_n = jax.random.split(key, 3)

    states = jax.random.normal(k_x, (B, STATE_DIM), jnp.float32)
    params = init_params(k_p, STATE_DIM, ACTION_DIM)
    prepared = prepare_params(params, ACTION_DIM)
    # torch.randn_like(actions): host-supplied deterministic gaussian noise.
    noise = jax.random.normal(k_n, (B, ACTION_DIM), jnp.float32)

    # Pure-f32 JAX reference of the PyTorch forward.
    def reference(std):
        w1, b1, w2, b2, w3, b3 = params
        h1 = jnp.maximum(states @ w1 + b1, 0.0)
        h2 = jnp.maximum(h1 @ w2 + b2, 0.0)
        y = h2 @ w3 + b3
        a = jnp.tanh(y[:, :ACTION_DIM])
        return jnp.clip(a + noise * std, -1.0, 1.0)

    # Case 1: module default std = 0.0 (noise input / FMA elided entirely).
    out0 = sac_actor_forward(states, prepared, action_dim=ACTION_DIM, std=0.0)
    jax.block_until_ready(out0)
    assert out0.shape == (B, ACTION_DIM)
    assert jnp.allclose(out0, reference(0.0), atol=2e-2), "std=0 mismatch"

    # Case 2: std != 0 exercises the noise path (std passed as an SMEM scalar).
    out1 = sac_actor_forward(states, prepared, action_dim=ACTION_DIM,
                             std=0.1, noise=noise)
    jax.block_until_ready(out1)
    assert jnp.allclose(out1, reference(0.1), atol=2e-2), "std!=0 mismatch"

    print("KERNEL_OK")
</pallas_src>

<mosaic_0001>
module attributes {stable_mosaic.version = 11 : i64} {
  func.func @_actor_kernel(%arg0: i32, %arg1: memref<8x32xbf16, #tpu.memory_space<vmem>>, %arg2: memref<32x256xbf16, #tpu.memory_space<vmem>>, %arg3: memref<1x256xf32, #tpu.memory_space<vmem>>, %arg4: memref<256x256xbf16, #tpu.memory_space<vmem>>, %arg5: memref<1x256xf32, #tpu.memory_space<vmem>>, %arg6: memref<256x4xbf16, #tpu.memory_space<vmem>>, %arg7: memref<1x4xf32, #tpu.memory_space<vmem>>, %arg8: memref<8x4xf32, #tpu.memory_space<vmem>>) attributes {dimension_semantics = [#tpu.dimension_semantics<parallel>], iteration_bounds = array<i64: 1>, scalar_prefetch = 0 : i64, scratch_operands = 0 : i64, tpu.core_type = #tpu.core_type<tc>, window_params = [{transform_indices = @transform_0, window_bounds = array<i64: 8, 32>}, {pipeline_mode = #tpu.pipeline_mode<synchronous>, transform_indices = @transform_1, window_bounds = array<i64: 32, 256>}, {pipeline_mode = #tpu.pipeline_mode<synchronous>, transform_indices = @transform_2, window_bounds = array<i64: 1, 256>}, {pipeline_mode = #tpu.pipeline_mode<synchronous>, transform_indices = @transform_3, window_bounds = array<i64: 256, 256>}, {pipeline_mode = #tpu.pipeline_mode<synchronous>, transform_indices = @transform_4, window_bounds = array<i64: 1, 256>}, {pipeline_mode = #tpu.pipeline_mode<synchronous>, transform_indices = @transform_5, window_bounds = array<i64: 256, 4>}, {pipeline_mode = #tpu.pipeline_mode<synchronous>, transform_indices = @transform_6, window_bounds = array<i64: 1, 4>}, {transform_indices = @transform_7, window_bounds = array<i64: 8, 4>}]} {
    %c0 = arith.constant 0 : index
    %c0_0 = arith.constant 0 : index
    %0 = vector.load %arg1[%c0, %c0_0] : memref<8x32xbf16, #tpu.memory_space<vmem>>, vector<8x32xbf16>
    %c0_1 = arith.constant 0 : index
    %c0_2 = arith.constant 0 : index
    %1 = vector.load %arg2[%c0_1, %c0_2] : memref<32x256xbf16, #tpu.memory_space<vmem>>, vector<32x256xbf16>
    %cst = arith.constant dense<0.000000e+00> : vector<8x256xf32>
    %2 = tpu.matmul %0, %1, %cst {dimension_numbers = #tpu.dot_dimension_numbers<[1], [0], [0], [1], [0, 0, 1, 1], [], []>} : vector<8x32xbf16>, vector<32x256xbf16>, vector<8x256xf32> -> vector<8x256xf32>
    %c0_3 = arith.constant 0 : index
    %c0_4 = arith.constant 0 : index
    %3 = vector.load %arg3[%c0_3, %c0_4] : memref<1x256xf32, #tpu.memory_space<vmem>>, vector<1x256xf32>
    %4 = vector.broadcast %3 : vector<1x256xf32> to vector<8x256xf32>
    %5 = arith.addf %2, %4 : vector<8x256xf32>
    %cst_5 = arith.constant 0.000000e+00 : f32
    %6 = vector.broadcast %cst_5 : f32 to vector<8x256xf32>
    %7 = arith.maximumf %5, %6 : vector<8x256xf32>
    %8 = arith.truncf %7 : vector<8x256xf32> to vector<8x256xbf16>
    %c0_6 = arith.constant 0 : index
    %c0_7 = arith.constant 0 : index
    %9 = vector.load %arg4[%c0_6, %c0_7] : memref<256x256xbf16, #tpu.memory_space<vmem>>, vector<256x256xbf16>
    %cst_8 = arith.constant dense<0.000000e+00> : vector<8x256xf32>
    %10 = tpu.matmul %8, %9, %cst_8 {dimension_numbers = #tpu.dot_dimension_numbers<[1], [0], [0], [1], [0, 0, 1, 1], [], []>} : vector<8x256xbf16>, vector<256x256xbf16>, vector<8x256xf32> -> vector<8x256xf32>
    %c0_9 = arith.constant 0 : index
    %c0_10 = arith.constant 0 : index
    %11 = vector.load %arg5[%c0_9, %c0_10] : memref<1x256xf32, #tpu.memory_space<vmem>>, vector<1x256xf32>
    %12 = vector.broadcast %11 : vector<1x256xf32> to vector<8x256xf32>
    %13 = arith.addf %10, %12 : vector<8x256xf32>
    %cst_11 = arith.constant 0.000000e+00 : f32
    %14 = vector.broadcast %cst_11 : f32 to vector<8x256xf32>
    %15 = arith.maximumf %13, %14 : vector<8x256xf32>
    %16 = arith.truncf %15 : vector<8x256xf32> to vector<8x256xbf16>
    %c0_12 = arith.constant 0 : index
    %c0_13 = arith.constant 0 : index
    %17 = vector.load %arg6[%c0_12, %c0_13] : memref<256x4xbf16, #tpu.memory_space<vmem>>, vector<256x4xbf16>
    %cst_14 = arith.constant dense<0.000000e+00> : vector<8x4xf32>
    %18 = tpu.matmul %16, %17, %cst_14 {dimension_numbers = #tpu.dot_dimension_numbers<[1], [0], [0], [1], [0, 0, 1, 1], [], []>} : vector<8x256xbf16>, vector<256x4xbf16>, vector<8x4xf32> -> vector<8x4xf32>
    %c0_15 = arith.constant 0 : index
    %c0_16 = arith.constant 0 : index
    %19 = vector.load %arg7[%c0_15, %c0_16] : memref<1x4xf32, #tpu.memory_space<vmem>>, vector<1x4xf32>
    %20 = vector.broadcast %19 : vector<1x4xf32> to vector<8x4xf32>
    %21 = arith.addf %18, %20 : vector<8x4xf32>
    %22 = math.tanh %21 : vector<8x4xf32>
    %cst_17 = arith.constant -1.000000e+00 : f32
    %cst_18 = arith.constant 1.000000e+00 : f32
    %23 = vector.broadcast %cst_17 : f32 to vector<8x4xf32>
    %24 = arith.maximumf %23, %22 : vector<8x4xf32>
    %25 = vector.broadcast %cst_18 : f32 to vector<8x4xf32>
    %26 = arith.minimumf %25, %24 : vector<8x4xf32>
    %c0_19 = arith.constant 0 : index
    %c0_20 = arith.constant 0 : index
    %27 = vector.load %arg8[%c0_19, %c0_20] : memref<8x4xf32, #tpu.memory_space<vmem>>, vector<8x4xf32>
    tpu.vector_store %arg8[%c0_19, %c0_20], %26 {strides = array<i32>} : memref<8x4xf32, #tpu.memory_space<vmem>>, vector<8x4xf32>,
    return
  }
  func.func @transform_0(%arg0: i32) -> (i32, i32) {
    %c0_i32 = arith.constant 0 : i32
    %c0_i32_0 = arith.constant 0 : i32
    return %arg0, %c0_i32 : i32, i32
  }
  func.func @transform_1(%arg0: i32) -> (i32, i32) {
    %c0_i32 = arith.constant 0 : i32
    %c0_i32_0 = arith.constant 0 : i32
    %c0_i32_1 = arith.constant 0 : i32
    return %c0_i32, %c0_i32_0 : i32, i32
  }
  func.func @transform_2(%arg0: i32) -> (i32, i32) {
    %c0_i32 = arith.constant 0 : i32
    %c0_i32_0 = arith.constant 0 : i32
    %c0_i32_1 = arith.constant 0 : i32
    return %c0_i32, %c0_i32_0 : i32, i32
  }
  func.func @transform_3(%arg0: i32) -> (i32, i32) {
    %c0_i32 = arith.constant 0 : i32
    %c0_i32_0 = arith.constant 0 : i32
    %c0_i32_1 = arith.constant 0 : i32
    return %c0_i32, %c0_i32_0 : i32, i32
  }
  func.func @transform_4(%arg0: i32) -> (i32, i32) {
    %c0_i32 = arith.constant 0 : i32
    %c0_i32_0 = arith.constant 0 : i32
    %c0_i32_1 = arith.constant 0 : i32
    return %c0_i32, %c0_i32_0 : i32, i32
  }
  func.func @transform_5(%arg0: i32) -> (i32, i32) {
    %c0_i32 = arith.constant 0 : i32
    %c0_i32_0 = arith.constant 0 : i32
    %c0_i32_1 = arith.constant 0 : i32
    return %c0_i32, %c0_i32_0 : i32, i32
  }
  func.func @transform_6(%arg0: i32) -> (i32, i32) {
    %c0_i32 = arith.constant 0 : i32
    %c0_i32_0 = arith.constant 0 : i32
    %c0_i32_1 = arith.constant 0 : i32
    return %c0_i32, %c0_i32_0 : i32, i32
  }
  func.func @transform_7(%arg0: i32) -> (i32, i32) {
    %c0_i32 = arith.constant 0 : i32
    %c0_i32_0 = arith.constant 0 : i32
    return %arg0, %c0_i32 : i32, i32
  }
}

</mosaic_0001>

<bundles_post_ra>
// kernel: tpu_custom_call.1
= control target key start
LH: loop header
LB: loop body
LE: loop exit
PB: predicated region body
PF: predicated region fallthrough
CT: control target
= control target key end

     0   :  { %12 = vsyncpa [#allocation3], 0  ;;  %s738_s24 = smov [#allocation2]   ;;  %s869_s0 = inlined_call_operand.vmem [shape: bf16[8,32], index: 0, kind: input, shape index: {}]   ;;  %s870_s1 = inlined_call_operand.vmem [shape: bf16[32,256], index: 1, kind: input, shape index: {}]   ;;  %s871_s2 = inlined_call_operand.vmem [shape: f32[1,256], index: 2, kind: input, shape index: {}]   ;;  %s872_s3 = inlined_call_operand.hbm [shape: bf16[256,256], index: 3, kind: input, shape index: {}]   ;;  %s873_s4 = inlined_call_operand.vmem [shape: f32[1,256], index: 4, kind: input, shape index: {}]   ;;  %s874_s5 = inlined_call_operand.vmem [shape: bf16[256,4], index: 5, kind: input, shape index: {}]   ;;  %s875_s6 = inlined_call_operand.vmem [shape: f32[1,4], index: 6, kind: input, shape index: {}]   ;;  %s876_s7 = inlined_call_operand.vmem [shape: f32[8,4], index: 7, kind: output, shape index: {}]  }
   0x1   :  { %s24_s25 = sshll.u32 %s738_s24, 4  ;;  %s714_s28 = scalar_lea.hbm %s872_s3, 4096  ;;  %s25_s25 = int_to_ptr.vmem [resolvable:$true] %s24_s25 }
   0x2   :  { %p715_p0 = scmp.ne.s32.totalorder %s872_s3, %s714_s28  ;;  %p718_p1 = scmp.lt.u32.totalorder %s714_s28, %s872_s3 }
   0x4   :  { %p720_p2 = pnand %p718_p1, %p715_p0 }
   0x6   :  { %723 = shalt.err (!%p720_p2)
}
   0x7   :  { %s724_s10 = scalar_lea.vmem %s25_s25, 4096  ;;  %p729_p4 = scmp.lt.s32.totalorder %s25_s25, %s25_s25 }
   0x8   :  { %p725_p3 = scmp.ne.s32.totalorder %s25_s25, %s724_s10  ;;  %p730_p5 = scmp.lt.s32.totalorder %s724_s10, %s724_s10 }
   0xa   :  { %p731_p6 = por %p730_p5, %p729_p4 }
   0xc   :  { %p732_p7 = pnand %p731_p6, %p725_p3 }
   0xe   :  { %735 = shalt.err (!%p732_p7)
}
   0xf   :  { %s739_s11 = smov 128   ;;  %s740_s12 = smov 8  }
  0x10   :  { %30 = dma.hbm_to_vmem [thread:$0]  %s872_s3, 4096, %s25_s25, [#allocation3], %s739_s11, %s739_s11, %s740_s12  }
  0x11   :  { %736 = dma.done.wait [#allocation3], 4096  }
  0x12   :  { %737 = vsyncadd [#allocation3], 4294963200  ;;  %v741_v0 = vmov 0   ;;  %v642_v1 = vld [vmem:[%s870_s1 + $0x4] ss:$8 sps:$4 sm:$0xff]   ;;  %vm78_vm0 = vcmask 261120   ;;  %v48_v50 = vlaneseq }
  0x13   :  { %114 = vmatprep.mubr.bf16.mxu0 %v741_v0  ;;  %v644_v2 = vld [vmem:[%s870_s1] ss:$8 sps:$4 sm:$0xff]   ;;  %82 = vmatprep.subr.bf16.mxu0 %v642_v1  ;;  %v645_v3 = vld [vmem:[%s870_s1 + $0x14] ss:$8 sps:$4 sm:$0xff]   ;;  %v647_v4 = vld [vmem:[%s870_s1 + $0x10] ss:$8 sps:$4 sm:$0xff]  }
  0x14   :  { %83 = vmatpush1.bf16.msra.mxu0 %v644_v2  ;;  %v648_v5 = vld [vmem:[#allocation2 + $0x4] ss:$8 sps:$4 sm:$0xff]   ;;  %v650_v6 = vld [vmem:[#allocation2] ss:$8 sps:$4 sm:$0xff]   ;;  %v651_v7 = vld [vmem:[#allocation2 + $0x14] ss:$8 sps:$4 sm:$0xff]  }
  0x15   :  { %84 = vmatprep.subr.bf16.mxu0 %v645_v3  ;;  %331 = vmatprep.subr.bf16.mxu1 %v648_v5  ;;  %v41_v8 = vld [vmem:[%s869_s0] sm:$0xf]  ;;  %v653_v9 = vld [vmem:[#allocation2 + $0x10] ss:$8 sps:$4 sm:$0xff]   ;;  %v654_v10 = vld [vmem:[#allocation2 + $0x24] ss:$8 sps:$4 sm:$0xff]  }
  0x16   :  { %332 = vmatpush1.bf16.msra.mxu1 %v650_v6  ;;  %v656_v11 = vld [vmem:[#allocation2 + $0x20] ss:$8 sps:$4 sm:$0xff]   ;;  %v657_v12 = vld [vmem:[#allocation2 + $0x34] ss:$8 sps:$4 sm:$0xff]   ;;  %v659_v13 = vld [vmem:[#allocation2 + $0x30] ss:$8 sps:$4 sm:$0xff]  }
  0x17   :  { %333 = vmatprep.subr.bf16.mxu1 %v651_v7  ;;  %v660_v14 = vld [vmem:[#allocation2 + $0x44] ss:$8 sps:$4 sm:$0xff]   ;;  %v662_v15 = vld [vmem:[#allocation2 + $0x40] ss:$8 sps:$4 sm:$0xff]   ;;  %v663_v16 = vld [vmem:[#allocation2 + $0x54] ss:$8 sps:$4 sm:$0xff]  }
  0x18   :  { %85 = vmatpush1.bf16.msra.mxu0 %v647_v4  ;;  %v665_v17 = vld [vmem:[#allocation2 + $0x50] ss:$8 sps:$4 sm:$0xff]   ;;  %v666_v18 = vld [vmem:[#allocation2 + $0x64] ss:$8 sps:$4 sm:$0xff]   ;;  %v668_v19 = vld [vmem:[#allocation2 + $0x60] ss:$8 sps:$4 sm:$0xff]  }
  0x19   :  { %v669_v20 = vld [vmem:[#allocation2 + $0x74] ss:$8 sps:$4 sm:$0xff]   ;;  %v671_v21 = vld [vmem:[#allocation2 + $0x70] ss:$8 sps:$4 sm:$0xff]   ;;  %v672_v22 = vld [vmem:[#allocation2 + $0x84] ss:$8 sps:$4 sm:$0xff]  }
  0x1a   :  { %334 = vmatpush1.bf16.msra.mxu1 %v653_v9  ;;  %v674_v23 = vld [vmem:[#allocation2 + $0x80] ss:$8 sps:$4 sm:$0xff]   ;;  %v675_v24 = vld [vmem:[#allocation2 + $0x94] ss:$8 sps:$4 sm:$0xff]   ;;  %v677_v25 = vld [vmem:[#allocation2 + $0x90] ss:$8 sps:$4 sm:$0xff]  }
  0x1b   :  { %565 = vmatmul.mubr.msk.bf16.vlgmr.msra.gmra.mrb[0].mxu0 %vm78_vm0, %v41_v8  ;;  %335 = vmatprep.subr.bf16.mxu1 %v654_v10  ;;  %v678_v26 = vld [vmem:[#allocation2 + $0xa4] ss:$8 sps:$4 sm:$0xff]   ;;  %v680_v27 = vld [vmem:[#allocation2 + $0xa0] ss:$8 sps:$4 sm:$0xff]   ;;  %v681_v28 = vld [vmem:[#allocation2 + $0xb4] ss:$8 sps:$4 sm:$0xff]  }
  0x1c   :  { %v683_v29 = vld [vmem:[#allocation2 + $0xb0] ss:$8 sps:$4 sm:$0xff]   ;;  %v684_v30 = vld [vmem:[#allocation2 + $0xc4] ss:$8 sps:$4 sm:$0xff]   ;;  %v686_v31 = vld [vmem:[#allocation2 + $0xc0] ss:$8 sps:$4 sm:$0xff]  }
  0x1d   :  { %v687_v32 = vld [vmem:[#allocation2 + $0xd4] ss:$8 sps:$4 sm:$0xff]   ;;  %v689_v33 = vld [vmem:[#allocation2 + $0xd0] ss:$8 sps:$4 sm:$0xff]   ;;  %v690_v34 = vld [vmem:[#allocation2 + $0xe4] ss:$8 sps:$4 sm:$0xff]  }
  0x1e   :  { %336 = vmatpush1.bf16.msra.mxu1 %v656_v11  ;;  %v692_v35 = vld [vmem:[#allocation2 + $0xe0] ss:$8 sps:$4 sm:$0xff]   ;;  %v693_v36 = vld [vmem:[#allocation2 + $0xf4] ss:$8 sps:$4 sm:$0xff]   ;;  %v695_v37 = vld [vmem:[#allocation2 + $0xf0] ss:$8 sps:$4 sm:$0xff]  }
  0x1f   :  { %337 = vmatprep.subr.bf16.mxu1 %v657_v12  ;;  %v696_v38 = vld [vmem:[%s874_s5 + $0x40] sm:$0xff]   ;;  %v698_v40 = vld [vmem:[%s874_s5 + $0x48] sm:$0xff]   ;;  %v700_v42 = vld [vmem:[%s874_s5 + $0x50] sm:$0xff]   ;;  %v49_v51 = vshrl.u32 %v48_v50, 7  ;;  %vm554_vm1 = vcmask 31744  }
  0x20   :  { %v697_v39 = vld [vmem:[%s874_s5] sm:$0xff]   ;;  %616 = vmatprep.subr.bf16.mxu0 %v696_v38  ;;  %v699_v41 = vld [vmem:[%s874_s5 + $0x8] sm:$0xff]   ;;  %v701_v43 = vld [vmem:[%s874_s5 + $0x10] sm:$0xff]  }
  0x21   :  { %617 = vmatpush3.bf16.msra.mxu0 %v697_v39  ;;  %v702_v44 = vld [vmem:[%s874_s5 + $0x58] sm:$0xff]   ;;  %v704_v46 = vld [vmem:[%s874_s5 + $0x60] sm:$0xff]   ;;  %v706_v48 = vld [vmem:[%s874_s5 + $0x68] sm:$0xff]   ;;  %v50_v52 = vsub.s32 0, %v49_v51  ;;  %v54_v54 = vsub.s32 1, %v49_v51 }
  0x22   :  { %338 = vmatpush1.bf16.msra.mxu1 %v659_v13  ;;  %618 = vmatprep.subr.bf16.mxu0 %v698_v40  ;;  %v703_v45 = vld [vmem:[%s874_s5 + $0x18] sm:$0xff]   ;;  %v705_v47 = vld [vmem:[%s874_s5 + $0x20] sm:$0xff]   ;;  %v707_v49 = vld [vmem:[%s874_s5 + $0x28] sm:$0xff]  }
  0x23   :  { %339 = vmatprep.subr.bf16.mxu1 %v660_v14  ;;  %v46_v53 = vld [vmem:[%s871_s2] sm:$0x3]  ;;  %v708_v3 = vld [vmem:[%s874_s5 + $0x70] sm:$0xff]   ;;  %v710_v5 = vld [vmem:[%s874_s5 + $0x78] sm:$0xff]  }
  0x24   :  { %v51_v55 = vrot.slane %v46_v53, %v50_v52  ;;  %v55_v56 = vrot.slane %v46_v53, %v54_v54  ;;  %v709_v4 = vld [vmem:[%s874_s5 + $0x30] sm:$0xff]   ;;  %v711_v6 = vld [vmem:[%s874_s5 + $0x38] sm:$0xff]   ;;  %v159_v7 = vld [vmem:[%s873_s4] sm:$0x3] }
  0x25   :  { %619 = vmatpush3.bf16.msra.mxu0 %v699_v41  ;;  %v164_v8 = vrot.slane %v159_v7, %v50_v52  ;;  %v168_v9 = vrot.slane %v159_v7, %v54_v54 }
  0x26   :  { %340 = vmatpush1.bf16.msra.mxu1 %v662_v15  ;;  %620 = vmatprep.subr.bf16.mxu0 %v700_v42 }
  0x27   :  { %341 = vmatprep.subr.bf16.mxu1 %v663_v16 }
  0x29   :  { %621 = vmatpush3.bf16.msra.mxu0 %v701_v43 }
  0x2a   :  { %342 = vmatpush1.bf16.msra.mxu1 %v665_v17  ;;  %622 = vmatprep.subr.bf16.mxu0 %v702_v44 }
  0x2b   :  { %343 = vmatprep.subr.bf16.mxu1 %v666_v18 }
  0x2d   :  { %623 = vmatpush3.bf16.msra.mxu0 %v703_v45 }
  0x2e   :  { %344 = vmatpush1.bf16.msra.mxu1 %v668_v19  ;;  %624 = vmatprep.subr.bf16.mxu0 %v704_v46 }
  0x2f   :  { %345 = vmatprep.subr.bf16.mxu1 %v669_v20 }
  0x31   :  { %625 = vmatpush3.bf16.msra.mxu0 %v705_v47 }
  0x32   :  { %346 = vmatpush1.bf16.msra.mxu1 %v671_v21  ;;  %626 = vmatprep.subr.bf16.mxu0 %v706_v48  ;;  %v598_v21 = vld [vmem:[%s875_s6] ss:$0 sm:$0xff] }
  0x33   :  { %347 = vmatprep.subr.bf16.mxu1 %v672_v22 }
  0x35   :  { %627 = vmatpush3.bf16.msra.mxu0 %v707_v49 }
  0x36   :  { %348 = vmatpush1.bf16.msra.mxu1 %v674_v23  ;;  %628 = vmatprep.subr.bf16.mxu0 %v708_v3 }
  0x37   :  { %349 = vmatprep.subr.bf16.mxu1 %v675_v24 }
  0x39   :  { %629 = vmatpush3.bf16.msra.mxu0 %v709_v4 }
  0x3a   :  { %350 = vmatpush1.bf16.msra.mxu1 %v677_v25  ;;  %630 = vmatprep.subr.bf16.mxu0 %v710_v5 }
  0x3b   :  { %351 = vmatprep.subr.bf16.mxu1 %v678_v26 }
  0x3d   :  { %631 = vmatpush3.bf16.msra.mxu0 %v711_v6 }
  0x3e   :  { %352 = vmatpush1.bf16.msra.mxu1 %v680_v27 }
  0x3f   :  { %353 = vmatprep.subr.bf16.mxu1 %v681_v28 }
  0x42   :  { %354 = vmatpush1.bf16.msra.mxu1 %v683_v29 }
  0x43   :  { %355 = vmatprep.subr.bf16.mxu1 %v684_v30 }
  0x46   :  { %356 = vmatpush1.bf16.msra.mxu1 %v686_v31 }
  0x47   :  { %357 = vmatprep.subr.bf16.mxu1 %v687_v32 }
  0x4a   :  { %358 = vmatpush1.bf16.msra.mxu1 %v689_v33 }
  0x4b   :  { %359 = vmatprep.subr.bf16.mxu1 %v690_v34 }
  0x4e   :  { %360 = vmatpush1.bf16.msra.mxu1 %v692_v35 }
  0x4f   :  { %361 = vmatprep.subr.bf16.mxu1 %v693_v36 }
  0x52   :  { %362 = vmatpush1.bf16.msra.mxu1 %v695_v37 }
  0xee   :  { %v116_v57 = vpop.f32.mrb[0].mxu0 }
  0xef   :  { %v117_v58 = vadd.f32 %v116_v57, %v51_v55  ;;  %v118_v59 = vpop.f32.mrb[1].mxu0 }
  0xf0   :  { %v119_v60 = vadd.f32 %v118_v59, %v55_v56  ;;  %v120_v61 = vpop.f32.mrb[2].mxu0 }
  0xf1   :  { %v123_v62 = vmax.f32 %v117_v58, 0.0  ;;  %v121_v63 = vpop.f32.mrb[3].mxu0 }
  0xf2   :  { %v124_v0 = vmax.f32 %v119_v60, 0.0 }
  0xf3   :  { %v125_v2 = vpack.c.bf16 %v123_v62, %v123_v62 }
  0xf4   :  { %v126_v1 = vpack.c.bf16 %v124_v0, %v124_v0 }
  0xf6   :  { %363 = vmatprep.mubr.bf16.mxu1 %v126_v1 }
  0xf7   :  { %364 = vmatmul.mubr.bf16.vlgmr.msra.gmra.mrb[0].mxu1 %v125_v2 }
 0x1ca   :  { %v365_v10 = vpop.f32.mrb[0].mxu1 }
 0x1cb   :  { %v366_v11 = vadd.f32 %v365_v10, %v164_v8  ;;  %v367_v12 = vpop.f32.mrb[1].mxu1 }
 0x1cc   :  { %v368_v13 = vadd.f32 %v367_v12, %v168_v9  ;;  %v369_v14 = vpop.f32.mrb[2].mxu1 }
 0x1cd   :  { %v372_v15 = vmax.f32 %v366_v11, 0.0  ;;  %v370_v16 = vpop.f32.mrb[3].mxu1 }
 0x1ce   :  { %v373_v17 = vmax.f32 %v368_v13, 0.0 }
 0x1cf   :  { %v374_v19 = vpack.c.bf16 %v372_v15, %v372_v15 }
 0x1d0   :  { %v375_v18 = vpack.c.bf16 %v373_v17, %v373_v17 }
 0x1d2   :  { %543 = vmatprep.mubr.bf16.mxu0 %v375_v18 }
 0x1d3   :  { %544 = vmatmul.mubr.bf16.vlgmr.msra.gmra.mrb[4].mxu0 %v374_v19 }
 0x2a6   :  { %v632_v20 = vpop.f32.mrb[4].mxu0 }
 0x2a7   :  { %v633_v22 = vpop.f32.mrb[5].mxu0 }
 0x2a8   :  { %v634_v23 = vadd.f32 %v633_v22, %v632_v20  ;;  %v635_v24 = vpop.f32.mrb[6].mxu0 }
 0x2a9   :  { %v636_v25 = vpop.f32.mrb[7].mxu0 }
 0x2aa   :  { %v546_v26 = vadd.f32 %v634_v23, %v598_v21 }
 0x2ac   :  { %712 = vtanh.f32 %v546_v26 }
 0x2b6   :  { %v713_v27 = vpop.eup %712 }
 0x2b7   :  { %v615_v28 = vclamps-f32 %v713_v27, 1.0 }
 0x2b9   :  { %555 = vst.msk [vmem:[%s876_s7] sm:$0xff] %vm554_vm1, %v615_v28 }
 0x2ba   :  { %560 = vsyncpa [#allocation3], 1 }

</bundles_post_ra>
